<compile_context>
chip_gen: v7x
topology: tpu7x:2x2x1
jax: 0.10.0
libtpu: 0.0.40
codegen_flags: <defaults>
</compile_context>

<pallas_src>
import jax
import jax.numpy as jnp
from jax.experimental import pallas as pl
from jax.experimental.pallas import tpu as pltpu  # noqa: F401  (TPU backend)

NEGATIVE_SLOPE = -0.483

N, C_IN, L_IN = 3, 5, 5
C_OUT, K = 6, 3
L_OUT = L_IN + K - 1          # stride=1, no padding -> 7
KC = C_IN * L_IN              # 25  (contraction size of the folded GEMM)
OT = C_OUT * L_OUT            # 42  (o-major flattened output columns)


def convt_leaky_kernel(x_ref, w_ref, b_ref, o_ref):
    # x_ref: (N, KC)=(3,25)  raw input, minor dims flattened (bitcast)
    # w_ref: (KC, OT)=(25,42) folded ConvTranspose1d weights
    # b_ref: (1, OT)          bias[o] repeated per output position (o-major)
    # o_ref: (N, OT)=(3,42)
    acc = jnp.dot(x_ref[...], w_ref[...], preferred_element_type=jnp.float32)
    acc = acc + b_ref[...]
    # v2 = v1 > 0 ; v3 = v1 * negative_slope ; v4 = where(v2, v1, v3)
    o_ref[...] = jnp.where(acc > 0, acc, acc * NEGATIVE_SLOPE).astype(o_ref.dtype)


def prep_params(weight, bias):
    """Parameter-only prep, done once.

    weight: (C_IN, C_OUT, K), bias: (C_OUT,)  ->  W_big (KC, OT), bias_row (1, OT)
    W_big[c*L_IN + l, o*L_OUT + t] = weight[c, o, t - l]  (0 outside the kernel taps)
    """
    c_idx = jnp.arange(C_IN)[:, None, None, None]
    l_idx = jnp.arange(L_IN)[None, :, None, None]
    o_idx = jnp.arange(C_OUT)[None, None, :, None]
    t_idx = jnp.arange(L_OUT)[None, None, None, :]
    k = t_idx - l_idx
    valid = (k >= 0) & (k < K)
    w4 = weight[c_idx, o_idx, jnp.clip(k, 0, K - 1)]          # (C_IN, L_IN, C_OUT, L_OUT)
    w_big = jnp.where(valid, w4, 0.0).reshape(KC, OT).astype(jnp.float32)
    bias_row = jnp.broadcast_to(bias[:, None], (C_OUT, L_OUT)).reshape(1, OT)
    return w_big, bias_row.astype(jnp.float32)


@jax.jit
def conv_transpose1d_leaky(x_ncl, w_big, bias_row):
    """x_ncl: (N, C_IN, L_IN) f32. Returns (N, C_OUT, L_OUT) f32 (PyTorch NCL layout)."""
    # Minor-dim collapse: pure bitcast, no data movement / no extra fusion.
    x2d = x_ncl.reshape(N, KC)

    out2d = pl.pallas_call(
        convt_leaky_kernel,
        out_shape=jax.ShapeDtypeStruct((N, OT), jnp.float32),
        in_specs=[
            pl.BlockSpec((N, KC), lambda: (0, 0)),
            pl.BlockSpec((KC, OT), lambda: (0, 0)),
            pl.BlockSpec((1, OT), lambda: (0, 0)),
        ],
        out_specs=pl.BlockSpec((N, OT), lambda: (0, 0)),
    )(x2d, w_big, bias_row)

    # Columns are already o-major, so this split is a bitcast (no transpose/copy).
    return out2d.reshape(N, C_OUT, L_OUT)


if __name__ == "__main__":
    key = jax.random.PRNGKey(0)
    kx, kw, kb = jax.random.split(key, 3)

    # Deterministic synthetic parameters (ConvTranspose1d(5, 6, 3) shapes).
    bound = 1.0 / (C_IN * K) ** 0.5
    weight = jax.random.uniform(kw, (C_IN, C_OUT, K), jnp.float32, -bound, bound)
    bias = jax.random.uniform(kb, (C_OUT,), jnp.float32, -bound, bound)
    w_big, bias_row = prep_params(weight, bias)   # parameter-only, once

    # Input matching torch.randn(3, 5, 5)  (N, C_IN, L_IN).
    x = jax.random.normal(kx, (N, C_IN, L_IN), jnp.float32)

    out = conv_transpose1d_leaky(x, w_big, bias_row)
    jax.block_until_ready(out)

    # Pure-JAX reference: full ConvTranspose1d (stride=1) + leaky.
    xp = jnp.pad(jnp.transpose(x, (0, 2, 1)), ((0, 0), (K - 1, K - 1), (0, 0)))  # (N, L_PAD, C_IN)
    wt = jnp.transpose(weight, (2, 0, 1))[::-1]                                  # (K, C_IN, C_OUT)
    ref = sum(jnp.einsum("nlc,co->nlo", xp[:, k:k + L_OUT, :], wt[k]) for k in range(K))
    ref = ref + bias[None, None, :]
    ref = jnp.where(ref > 0, ref, ref * NEGATIVE_SLOPE)
    ref_ncl = jnp.transpose(ref, (0, 2, 1))                                      # (N, C_OUT, L_OUT)

    assert out.shape == (N, C_OUT, L_OUT)
    assert jnp.allclose(out, ref_ncl, atol=1e-5), "mismatch vs reference"

    print("KERNEL_OK")
</pallas_src>

<mosaic_0001>
module attributes {stable_mosaic.version = 11 : i64} {
  func.func @convt_leaky_kernel(%arg0: memref<3x25xf32, #tpu.memory_space<vmem>>, %arg1: memref<25x42xf32, #tpu.memory_space<vmem>>, %arg2: memref<1x42xf32, #tpu.memory_space<vmem>>, %arg3: memref<3x42xf32, #tpu.memory_space<vmem>>) attributes {dimension_semantics = [], scalar_prefetch = 0 : i64, scratch_operands = 0 : i64, tpu.core_type = #tpu.core_type<tc>} {
    %c0 = arith.constant 0 : index
    %c0_0 = arith.constant 0 : index
    %0 = vector.load %arg0[%c0, %c0_0] : memref<3x25xf32, #tpu.memory_space<vmem>>, vector<3x25xf32>
    %c0_1 = arith.constant 0 : index
    %c0_2 = arith.constant 0 : index
    %1 = vector.load %arg1[%c0_1, %c0_2] : memref<25x42xf32, #tpu.memory_space<vmem>>, vector<25x42xf32>
    %cst = arith.constant dense<0.000000e+00> : vector<3x42xf32>
    %2 = tpu.matmul %0, %1, %cst {dimension_numbers = #tpu.dot_dimension_numbers<[1], [0], [0], [1], [0, 0, 1, 1], [], []>} : vector<3x25xf32>, vector<25x42xf32>, vector<3x42xf32> -> vector<3x42xf32>
    %c0_3 = arith.constant 0 : index
    %c0_4 = arith.constant 0 : index
    %3 = vector.load %arg2[%c0_3, %c0_4] : memref<1x42xf32, #tpu.memory_space<vmem>>, vector<1x42xf32>
    %4 = vector.broadcast %3 : vector<1x42xf32> to vector<3x42xf32>
    %5 = arith.addf %2, %4 : vector<3x42xf32>
    %cst_5 = arith.constant 0.000000e+00 : f32
    %6 = vector.broadcast %cst_5 : f32 to vector<3x42xf32>
    %7 = arith.cmpf ogt, %5, %6 : vector<3x42xf32>
    %cst_6 = arith.constant -4.830000e-01 : f32
    %8 = vector.broadcast %cst_6 : f32 to vector<3x42xf32>
    %9 = arith.mulf %5, %8 : vector<3x42xf32>
    %10 = arith.select %7, %5, %9 : vector<3x42xi1>, vector<3x42xf32>
    %c0_7 = arith.constant 0 : index
    %c0_8 = arith.constant 0 : index
    %11 = vector.load %arg3[%c0_7, %c0_8] : memref<3x42xf32, #tpu.memory_space<vmem>>, vector<3x42xf32>
    tpu.vector_store %arg3[%c0_7, %c0_8], %10 {strides = array<i32>} : memref<3x42xf32, #tpu.memory_space<vmem>>, vector<3x42xf32>,
    return
  }
}

</mosaic_0001>

<bundles_post_ra>
// kernel: conv_transpose1d_leaky.1
= control target key start
LH: loop header
LB: loop body
LE: loop exit
PB: predicated region body
PF: predicated region fallthrough
CT: control target
= control target key end

     0   :  { %v143_v0 = vmov 0.0|0.0   ;;  %vm30_vm0 = vcmask 1040384   ;;  %vm144_vm1 = vmmov 0   ;;  %v145_v6 = vmov 0.0   ;;  %s188_s1 = inlined_call_operand.vmem [shape: f32[25,42], index: 1, kind: input, shape index: {}]   ;;  %s189_s0 = inlined_call_operand.vmem [shape: f32[3,25], index: 0, kind: input, shape index: {}]   ;;  %s190_s2 = inlined_call_operand.vmem [shape: f32[1,42], index: 2, kind: input, shape index: {}]   ;;  %s191_s3 = inlined_call_operand.vmem [shape: f32[3,42], index: 3, kind: output, shape index: {}]  }
   0x1   :  { %132 = vmatprep.subr.bf16.mxu0 %v143_v0  ;;  %v15_v1 = vld [vmem:[%s188_s1] sm:$0xff]  ;;  %v16_v2 = vld [vmem:[%s188_s1 + $0x8] sm:$0xff]  ;;  %v17_v3 = vld [vmem:[%s188_s1 + $0x10] sm:$0xff]  ;;  %129 = vmatprep.mubr.msk.f32.mxu0 %vm144_vm1, %v145_v6  ;;  %vm146_vm2 = vmmov 1   ;;  %vm26_vm4 = vcmask 203776   ;;  %vm107_vm6 = vcmask 337920  }
   0x2   :  { %v133_v4 = vpack.c.bf16 %v16_v2, %v15_v1  ;;  %v18_v5 = vld [vmem:[%s188_s1 + $0x18] sm:$0x1]  ;;  %vm137_vm3 = vmpackc.low %vm30_vm0, %vm146_vm2  ;;  %v14_v8 = vld [vmem:[%s189_s0] sm:$0x7] }
   0x3   :  { %v136_v7 = vpack.c.bf16 %v18_v5, %v17_v3  ;;  %v113_v9 = vld [vmem:[%s190_s2] ss:$0 sm:$0xff] }
   0x4   :  { %134 = vmatpush3.bf16.msra.mxu0 %v133_v4 }
   0x5   :  { %135 = vmatprep.subr.bf16.mxu0 %v143_v0 }
   0x8   :  { %138 = vmatpush3.bf16.msk.msra.mxu0 %vm137_vm3, %v136_v7 }
   0xb   :  { %130 = vmatmul.mubr.msk.f32.vlgmr.msra.gmra.mrb[0].mxu0 %vm26_vm4, %v14_v8 }
  0xde   :  { %v100_v10 = vpop.f32.mrb[0].mxu0 }
  0xdf   :  { %v101_v11 = vadd.f32 %v113_v9, %v100_v10  ;;  %v131_v12 = vpop.f32.mrb[1].mxu0 }
  0xe1   :  { %vm104_vm5 = vcmp.gt.f32.partialorder %v101_v11, 0.0  ;;  %v105_v13 = vmul.f32 -0.483, %v101_v11 }
  0xe3   :  { %v106_v14 = vsel %vm104_vm5, %v101_v11, %v105_v13 }
  0xe4   :  { %108 = vst.msk [vmem:[%s191_s3] sm:$0x7] %vm107_vm6, %v106_v14 }

</bundles_post_ra>
